<compile_context>
chip_gen: v5e
topology: v5e:2x2
jax: 0.10.0
libtpu: 0.0.40
codegen_flags: <defaults>
</compile_context>

<pallas_src>
import functools

import jax
import jax.numpy as jnp
from jax import lax
from jax.experimental import pallas as pl
from jax.experimental.pallas import tpu as pltpu

HIDDEN = 20
LANE = 128  # TPU lane width


def _mine_kernel(x_ref, y_ref, p_ref, o_ref, *, n_dim, hidden):
    """One batch tile of the MINE MLP, batch on the lane axis.

    x_ref  : (TB, n_dim)      -- streamed x tile (batch on sublanes)
    y_ref  : (TB, n_dim)      -- streamed y tile
    p_ref  : (hidden, 3*128)  -- packed parameter slab:
               lanes [0       : n_dim   )  W1                       (hidden, n_dim)
               lanes [n_dim   : 2*n_dim )  W2                       (hidden, n_dim)
               lanes [128     : 128+hidden) W3                      (hidden, hidden)
               lanes [256..259]             b1+b2 | b3 | w4 | b4    columns
    o_ref  : (1, TB)          -- lane-dense output row for this tile
    """
    w1 = p_ref[:, 0:n_dim]                                # (hidden, n_dim)
    w2 = p_ref[:, n_dim:2 * n_dim]                        # (hidden, n_dim)
    w3 = p_ref[:, LANE:LANE + hidden]                     # (hidden, hidden)
    b12 = p_ref[:, 2 * LANE + 0:2 * LANE + 1]             # (hidden, 1)
    b3 = p_ref[:, 2 * LANE + 1:2 * LANE + 2]              # (hidden, 1)
    w4 = p_ref[:, 2 * LANE + 2:2 * LANE + 3]              # (hidden, 1)
    b4 = p_ref[0:1, 2 * LANE + 3:2 * LANE + 4]            # (1, 1)

    # Contract the feature axis of the streamed (TB, n_dim) tiles directly:
    # (hidden, n_dim) x (TB, n_dim) -> (hidden, TB), batch lane-dense.
    dn = (((1,), (1,)), ((), ()))
    h = lax.dot_general(w1, x_ref[...], dn, preferred_element_type=jnp.float32)
    h = h + lax.dot_general(w2, y_ref[...], dn, preferred_element_type=jnp.float32)
    h = jnp.maximum(h + b12, 0.0)                         # ReLU(h1), f32
    h = h.astype(p_ref.dtype)                             # keep bf16 MXU path if bf16
    # h2 = W3 @ h1 + b3
    h = jnp.dot(w3, h, preferred_element_type=jnp.float32) + b3
    h = jnp.maximum(h, 0.0)
    # out = w4 . h2 + b4   -- VPU multiply + sublane (XLU) reduce, no N=1 matmul
    out = jnp.sum(h * w4, axis=0, keepdims=True) + b4     # (1, TB), lane-dense
    o_ref[...] = out.astype(o_ref.dtype)


def pack_params(params, dtype=jnp.float32):
    """Pack PyTorch-layout params ((W1,b1),(W2,b2),(W3,b3),(W4,b4)) into one slab.

    Call this once per parameter update (not per forward) in a training loop.
    """
    (w1, b1), (w2, b2), (w3, b3), (w4, b4) = params
    hidden, n_dim = w1.shape
    assert 2 * n_dim <= LANE and hidden + 4 <= LANE, "slab packing assumes small dims"
    # TODO(synk): for N_dim > 64 split the slab into per-matrix operands.
    slab = jnp.zeros((hidden, 3 * LANE), jnp.float32)
    slab = slab.at[:, 0:n_dim].set(w1)
    slab = slab.at[:, n_dim:2 * n_dim].set(w2)
    slab = slab.at[:, LANE:LANE + hidden].set(w3)
    slab = slab.at[:, 2 * LANE + 0].set(b1 + b2)                          # fused bias
    slab = slab.at[:, 2 * LANE + 1].set(b3)
    slab = slab.at[:, 2 * LANE + 2].set(w4[0])                            # w4 row -> col
    slab = slab.at[:, 2 * LANE + 3].set(jnp.broadcast_to(b4, (hidden,)))  # b4
    return slab.astype(dtype)


def mine_forward(x, y, params, *, block_batch=16384):
    """Pallas forward pass equivalent to Mine(N_dim)(x, y).

    `params` is either the PyTorch-layout tuple ((W1,b1),...,(W4,b4)) or a
    pre-packed slab from pack_params().  x / y are used in their stored dtype
    (pass bf16 inputs to get the halved-HBM-traffic path on v6e/v7x).
    """
    batch, n_dim = x.shape
    assert y.shape == x.shape
    if isinstance(params, (tuple, list)):
        slab = pack_params(params, dtype=x.dtype)
    else:
        slab = params
    hidden = slab.shape[0]

    itemsize = jnp.dtype(x.dtype).itemsize

    # ---- batch tile selection ------------------------------------------------
    max_tb = pl.cdiv(batch, LANE) * LANE
    tb = min(block_batch, max_tb)
    tb = max(LANE, (tb // LANE) * LANE)
    # Keep >= 2 grid steps when possible so the "parallel" axis feeds both TCs.
    if tb >= max_tb and max_tb > LANE:
        tb = pl.cdiv(pl.cdiv(batch, 2), LANE) * LANE
    # VMEM guard: stay well under v5e's 16 MiB default scoped limit.
    hp = ((hidden + 7) // 8) * 8

    def _vmem_bytes(t):
        stream = 2 * 2 * t * n_dim * itemsize       # x,y double-buffered
        interm = 4 * hp * t * 4                     # f32 (hidden, TB) temporaries
        outb = 2 * t * 4                            # output row double-buffered
        slab_b = 2 * hidden * 3 * LANE * jnp.dtype(slab.dtype).itemsize
        return stream + interm + outb + slab_b

    while tb > LANE and _vmem_bytes(tb) > 12 * 1024 * 1024:
        tb = max(LANE, (tb // 2 // LANE) * LANE)
    num_tiles = pl.cdiv(batch, tb)

    # Ragged last tile: no jnp.pad -- Pallas masks the OOB output write and the
    # garbage columns never mix with valid lanes (all math is per-lane /
    # contracts only the feature & hidden axes).

    cost = pl.CostEstimate(
        flops=2 * batch * (hidden * 2 * n_dim + hidden * hidden + hidden),
        transcendentals=0,
        bytes_accessed=batch * (2 * n_dim * itemsize + 4)
        + int(slab.size) * jnp.dtype(slab.dtype).itemsize,
    )

    out = pl.pallas_call(
        functools.partial(_mine_kernel, n_dim=n_dim, hidden=hidden),
        out_shape=jax.ShapeDtypeStruct((1, batch), jnp.float32),
        grid=(num_tiles,),
        in_specs=[
            pl.BlockSpec((tb, n_dim), lambda i: (i, 0)),          # streamed x tile
            pl.BlockSpec((tb, n_dim), lambda i: (i, 0)),          # streamed y tile
            pl.BlockSpec((hidden, 3 * LANE), lambda i: (0, 0)),   # resident param slab
        ],
        out_specs=pl.BlockSpec((1, tb), lambda i: (0, i)),        # lane-dense output row
        compiler_params=pltpu.CompilerParams(
            dimension_semantics=("parallel",),
        ),
        cost_estimate=cost,
    )(x, y, slab)

    return out.reshape(batch, 1)


def init_params(key, n_dim, hidden=HIDDEN):
    """PyTorch-style init: W is (out_features, in_features), b is (out_features,)."""
    def linear(key, fan_in, fan_out):
        k_w, k_b = jax.random.split(key)
        bound = 1.0 / jnp.sqrt(fan_in)
        w = jax.random.uniform(k_w, (fan_out, fan_in), jnp.float32, -bound, bound)
        b = jax.random.uniform(k_b, (fan_out,), jnp.float32, -bound, bound)
        return w, b

    k1, k2, k3, k4 = jax.random.split(key, 4)
    return (
        linear(k1, n_dim, hidden),   # self.input1
        linear(k2, n_dim, hidden),   # self.input2
        linear(k3, hidden, hidden),  # layers[1]: Linear(20, 20)
        linear(k4, hidden, 1),       # layers[3]: Linear(20, 1)
    )


def mine_reference(x, y, params):
    (w1, b1), (w2, b2), (w3, b3), (w4, b4) = params
    h1 = x @ w1.T + b1 + y @ w2.T + b2
    h = jnp.maximum(h1, 0.0)
    h = jnp.maximum(h @ w3.T + b3, 0.0)
    return h @ w4.T + b4


if __name__ == "__main__":
    # Keep the pure-JAX reference in true f32 so the comparison is meaningful.
    jax.config.update("jax_default_matmul_precision", "highest")

    key = jax.random.PRNGKey(0)
    k_x, k_noise, k_p = jax.random.split(key, 3)

    batch, n_dim = 200, 8            # non-multiple of the tile -> exercises the ragged last block
    x = jax.random.normal(k_x, (batch, n_dim), jnp.float32)
    noise = jax.random.normal(k_noise, (batch, n_dim), jnp.float32)
    y = x + noise                    # mirrors `y = x + noise` in the original script

    params = init_params(k_p, n_dim)

    # Pack once (as a training loop would), then run the kernel.
    slab = pack_params(params, dtype=x.dtype)
    out = mine_forward(x, y, slab)   # auto-tiles to 2 grid steps at this toy size
    out = jax.block_until_ready(out)

    ref = mine_reference(x, y, params)
    assert out.shape == (batch, 1)
    assert jnp.allclose(out, ref, atol=1e-5, rtol=1e-5)

    print("KERNEL_OK")
</pallas_src>

<mosaic_0001>
module attributes {stable_mosaic.version = 11 : i64} {
  func.func @_mine_kernel(%arg0: i32, %arg1: memref<128x8xf32, #tpu.memory_space<vmem>>, %arg2: memref<128x8xf32, #tpu.memory_space<vmem>>, %arg3: memref<20x384xf32, #tpu.memory_space<vmem>>, %arg4: memref<1x128xf32, #tpu.memory_space<vmem>>) attributes {dimension_semantics = [#tpu.dimension_semantics<parallel>], iteration_bounds = array<i64: 2>, scalar_prefetch = 0 : i64, scratch_operands = 0 : i64, tpu.core_type = #tpu.core_type<tc>, window_params = [{transform_indices = @transform_0, window_bounds = array<i64: 128, 8>}, {transform_indices = @transform_1, window_bounds = array<i64: 128, 8>}, {pipeline_mode = #tpu.pipeline_mode<synchronous>, transform_indices = @transform_2, window_bounds = array<i64: 20, 384>}, {transform_indices = @transform_3, window_bounds = array<i64: 1, 128>}]} {
    %c0 = arith.constant 0 : index
    %c0_0 = arith.constant 0 : index
    %0 = vector.load %arg3[%c0, %c0_0] : memref<20x384xf32, #tpu.memory_space<vmem>>, vector<20x8xf32>
    %c0_1 = arith.constant 0 : index
    %c8 = arith.constant 8 : index
    %1 = vector.load %arg3[%c0_1, %c8] : memref<20x384xf32, #tpu.memory_space<vmem>>, vector<20x8xf32>
    %c0_2 = arith.constant 0 : index
    %c128 = arith.constant 128 : index
    %2 = vector.load %arg3[%c0_2, %c128] : memref<20x384xf32, #tpu.memory_space<vmem>>, vector<20x20xf32>
    %c0_3 = arith.constant 0 : index
    %c256 = arith.constant 256 : index
    %3 = vector.load %arg3[%c0_3, %c256] : memref<20x384xf32, #tpu.memory_space<vmem>>, vector<20x1xf32>
    %c0_4 = arith.constant 0 : index
    %c257 = arith.constant 257 : index
    %4 = vector.load %arg3[%c0_4, %c257] : memref<20x384xf32, #tpu.memory_space<vmem>>, vector<20x1xf32>
    %c0_5 = arith.constant 0 : index
    %c258 = arith.constant 258 : index
    %5 = vector.load %arg3[%c0_5, %c258] : memref<20x384xf32, #tpu.memory_space<vmem>>, vector<20x1xf32>
    %c0_6 = arith.constant 0 : index
    %c259 = arith.constant 259 : index
    %6 = vector.load %arg3[%c0_6, %c259] : memref<20x384xf32, #tpu.memory_space<vmem>>, vector<1x1xf32>
    %c0_7 = arith.constant 0 : index
    %c0_8 = arith.constant 0 : index
    %7 = vector.load %arg1[%c0_7, %c0_8] : memref<128x8xf32, #tpu.memory_space<vmem>>, vector<128x8xf32>
    %cst = arith.constant dense<0.000000e+00> : vector<20x128xf32>
    %8 = tpu.matmul %0, %7, %cst {dimension_numbers = #tpu.dot_dimension_numbers<[1], [1], [0], [0], [0, 0, 1, 0], [], []>, precision = #tpu.contract_precision<fp32>} : vector<20x8xf32>, vector<128x8xf32>, vector<20x128xf32> -> vector<20x128xf32>
    %c0_9 = arith.constant 0 : index
    %c0_10 = arith.constant 0 : index
    %9 = vector.load %arg2[%c0_9, %c0_10] : memref<128x8xf32, #tpu.memory_space<vmem>>, vector<128x8xf32>
    %cst_11 = arith.constant dense<0.000000e+00> : vector<20x128xf32>
    %10 = tpu.matmul %1, %9, %cst_11 {dimension_numbers = #tpu.dot_dimension_numbers<[1], [1], [0], [0], [0, 0, 1, 0], [], []>, precision = #tpu.contract_precision<fp32>} : vector<20x8xf32>, vector<128x8xf32>, vector<20x128xf32> -> vector<20x128xf32>
    %11 = arith.addf %8, %10 : vector<20x128xf32>
    %12 = vector.broadcast %3 : vector<20x1xf32> to vector<20x128xf32>
    %13 = arith.addf %11, %12 : vector<20x128xf32>
    %cst_12 = arith.constant 0.000000e+00 : f32
    %14 = vector.broadcast %cst_12 : f32 to vector<20x128xf32>
    %15 = arith.maximumf %13, %14 : vector<20x128xf32>
    %cst_13 = arith.constant dense<0.000000e+00> : vector<20x128xf32>
    %16 = tpu.matmul %2, %15, %cst_13 {dimension_numbers = #tpu.dot_dimension_numbers<[1], [0], [0], [1], [0, 0, 1, 1], [], []>, precision = #tpu.contract_precision<fp32>} : vector<20x20xf32>, vector<20x128xf32>, vector<20x128xf32> -> vector<20x128xf32>
    %17 = vector.broadcast %4 : vector<20x1xf32> to vector<20x128xf32>
    %18 = arith.addf %16, %17 : vector<20x128xf32>
    %cst_14 = arith.constant 0.000000e+00 : f32
    %19 = vector.broadcast %cst_14 : f32 to vector<20x128xf32>
    %20 = arith.maximumf %18, %19 : vector<20x128xf32>
    %21 = vector.broadcast %5 : vector<20x1xf32> to vector<20x128xf32>
    %22 = arith.mulf %20, %21 : vector<20x128xf32>
    %cst_15 = arith.constant dense<0.000000e+00> : vector<128xf32>
    %23 = vector.multi_reduction <add>, %22, %cst_15 [0] : vector<20x128xf32> to vector<128xf32>
    %24 = vector.shape_cast %23 : vector<128xf32> to vector<1x128xf32>
    %25 = vector.broadcast %6 : vector<1x1xf32> to vector<1x128xf32>
    %26 = arith.addf %24, %25 : vector<1x128xf32>
    %c0_16 = arith.constant 0 : index
    %c0_17 = arith.constant 0 : index
    %27 = vector.load %arg4[%c0_16, %c0_17] : memref<1x128xf32, #tpu.memory_space<vmem>>, vector<1x128xf32>
    tpu.vector_store %arg4[%c0_16, %c0_17], %26 {strides = array<i32>} : memref<1x128xf32, #tpu.memory_space<vmem>>, vector<1x128xf32>,
    return
  }
  func.func @transform_0(%arg0: i32) -> (i32, i32) {
    %c0_i32 = arith.constant 0 : i32
    %c0_i32_0 = arith.constant 0 : i32
    return %arg0, %c0_i32 : i32, i32
  }
  func.func @transform_1(%arg0: i32) -> (i32, i32) {
    %c0_i32 = arith.constant 0 : i32
    %c0_i32_0 = arith.constant 0 : i32
    return %arg0, %c0_i32 : i32, i32
  }
  func.func @transform_2(%arg0: i32) -> (i32, i32) {
    %c0_i32 = arith.constant 0 : i32
    %c0_i32_0 = arith.constant 0 : i32
    %c0_i32_1 = arith.constant 0 : i32
    return %c0_i32, %c0_i32_0 : i32, i32
  }
  func.func @transform_3(%arg0: i32) -> (i32, i32) {
    %c0_i32 = arith.constant 0 : i32
    %c0_i32_0 = arith.constant 0 : i32
    return %c0_i32, %arg0 : i32, i32
  }
}

</mosaic_0001>

<bundles_post_ra>
// kernel: tpu_custom_call.1
= control target key start
LH: loop header
LB: loop body
LE: loop exit
PB: predicated region body
PF: predicated region fallthrough
CT: control target
= control target key end

     0   :  { %8 = vsyncpa [#allocation3], 0  ;;  %s2580_s0 = inlined_call_operand.vmem [shape: f32[200,8], index: 0, kind: input, shape index: {}]   ;;  %s2581_s1 = inlined_call_operand.vmem [shape: f32[200,8], index: 1, kind: input, shape index: {}]   ;;  %s2582_s2 = inlined_call_operand.vmem [shape: f32[20,384], index: 2, kind: input, shape index: {}]   ;;  %s2583_s3 = inlined_call_operand.hbm [shape: f32[1,200], index: 3, kind: output, shape index: {}]  }
   0x1   :  { %10 = vsyncpa [#allocation3 + $0x1], 0  ;;  %s1752_s12 = smov 0   ;;  %s1754_s13 = smov 0  }
   0x2   :  { %s1756_s14 = smov 0   ;;  %s1758_s15 = smov 0  }
   0x3 LB: > { %s1773_s16 = sadd.s32 4294967295, %s1725_s15   ;;  %s1593_s17 = sadd.s32 4294967294, %s1725_s15   ;;  %s1725_s15 = sphi %s1758_s15, %s2631_s15   ;;  %s1721_s14 = sphi %s1756_s14, %s2630_s14   ;;  %s1717_s13 = sphi %s1754_s13, %s2629_s13   ;;  %s1713_s12 = sphi %s1752_s12, %s2628_s12  }
   0x4   : > { %s1777_s18 = sadd.s32 1, %s1725_s15   ;;  %s96_s19 = sadd.s32 1, %s1721_s14 }
   0x5   : > { %s93_s20 = ssub.s32 %s1725_s15, %s1777_s18  ;;  %p106_p0 = scmp.ne.s32.totalorder %s1721_s14, %s1717_s13 }
   0x6   : > { %p94_p1 = scmp.eq.s32.totalorder %s93_s20, 0  ;;  %p107_p2 = scmp.eq.s32.totalorder %s1773_s16, 1 }
   0x7   : > { %p112_p3 = scmp.ne.s32.totalorder %s1717_s13, %s1713_s12  ;;  %p113_p4 = scmp.eq.s32.totalorder %s1593_s17, 1 }
   0x8   : > { %s1788_s21 = scalar_select %p94_p1, %s1721_s14, %s96_s19  }
   0x9   : > { %p1790_p5 = por %p107_p2, %p106_p0  ;;  %p1794_p6 = por %p113_p4, %p112_p3 }
   0xa   : > { %p1596_p7 = scmp.ge.s32.totalorder %s1725_s15, 1  ;;  %p168_p8 = scmp.lt.s32.totalorder %s1725_s15, 3 }
   0xc   : > { %p169_p9 = pnand %p1596_p7, %p168_p8 }
   0xd   : > { %s1597_s26 = sshll.u32 (!%p169_p9), %s1773_s16, 4  ;;  %s1727_s27 = smov (!%p169_p9), 120  }
   0xe   : > { %172 = sbr.rel (%p169_p9) target bundleno = 589 (0x24d), region = 32  ;;  %p209_p10 = scmp.lt.s32.totalorder (!%p169_p9), %s1597_s26, 24 }
   0xf   : > { %s1683_s28 = scalar_lea.hbm (!%p169_p9), %s2583_s3, 2 }
  0x13   : > { %v1803_v0 = vld [vmem:[%s2582_s2] sm:$0xff]  ;;  %v1810_v1 = vld [vmem:[%s2582_s2 + $0x30] sm:$0xf]  ;;  %s2633_s26 = smov (!%p209_p10, %s1597_s26), 24  ;;  %vm283_vm0 = vcmask 64512   ;;  %v1819_v2 = vld [vmem:[%s2582_s2 + $0x18] sm:$0xff] }
  0x14   : > { %277 = vrot.lane.b32.xlu0 %v1803_v0, %s1727_s27  ;;  %281 = vrot.lane.b32.xlu1 %v1810_v1, %s1727_s27  ;;  %s1598_s30 = sshll.u32 %s2633_s26, 3  ;;  %vm1231_vm1 = vcmask 162816   ;;  %vm1241_vm2 = vcmask 1043456  }
  0x15   : > { %s1826_s8 = scalar_lea.vmem %s2581_s1, %s1598_s30  ;;  %s1980_s11 = scalar_lea.vmem %s2580_s0, %s1598_s30 }
  0x16   : > { %v273_v3 = vld [vmem:[%s1826_s8 + $0x78] sm:$0xff]  ;;  %v272_v4 = vld [vmem:[%s1826_s8 + $0x70] sm:$0xff]  ;;  %v271_v5 = vld [vmem:[%s1826_s8 + $0x68] sm:$0xff] }
  0x17   : > { %v336_v6 = vsel %vm283_vm0, %v273_v3, 0  ;;  %v333_v7 = vsel %vm283_vm0, %v272_v4, 0  ;;  %v330_v8 = vsel %vm283_vm0, %v271_v5, 0  ;;  %v270_v9 = vld [vmem:[%s1826_s8 + $0x60] sm:$0xff]  ;;  %v269_v10 = vld [vmem:[%s1826_s8 + $0x58] sm:$0xff]  ;;  %v268_v20 = vld [vmem:[%s1826_s8 + $0x50] sm:$0xff] }
  0x18   : > { %v1837_v11 = vand.u32 4294901760, %v336_v6  ;;  %v1839_v12 = vand.u32 4294901760, %v333_v7  ;;  %v1841_v13 = vand.u32 4294901760, %v330_v8  ;;  %v327_v14 = vsel %vm283_vm0, %v270_v9, 0  ;;  %v267_v29 = vld [vmem:[%s1826_s8 + $0x48] sm:$0xff]  ;;  %v266_v37 = vld [vmem:[%s1826_s8 + $0x40] sm:$0xff] }
  0x19   : > { %v1844_v15 = vand.u32 4294901760, %v327_v14  ;;  %v324_v19 = vsel %vm283_vm0, %v269_v10, 0  ;;  %v321_v24 = vsel %vm283_vm0, %v268_v20, 0  ;;  %v318_v32 = vsel %vm283_vm0, %v267_v29, 0  ;;  %v265_v44 = vld [vmem:[%s1826_s8 + $0x38] sm:$0xff]  ;;  %v264_v51 = vld [vmem:[%s1826_s8 + $0x30] sm:$0xff] }
  0x1a   : > { %339 = vmatpush.xpose.msra.mxu0 %v1837_v11  ;;  %v1848_v16 = vsub.f32 %v336_v6, %v1837_v11  ;;  %569 = vmatpush.xpose.msra.mxu3 %v1837_v11  ;;  %v1852_v17 = vsub.f32 %v333_v7, %v1839_v12  ;;  %v1855_v18 = vsub.f32 %v330_v8, %v1841_v13  ;;  %v1862_v23 = vand.u32 4294901760, %v324_v19  ;;  %v263_v57 = vld [vmem:[%s1826_s8 + $0x28] sm:$0xff]  ;;  %v262_v4 = vld [vmem:[%s1826_s8 + $0x20] sm:$0xff] }
  0x1b   : > { %v1875_v28 = vsub.f32 %v327_v14, %v1844_v15  ;;  %v1879_v31 = vand.u32 4294901760, %v321_v24  ;;  %v1893_v38 = vand.u32 4294901760, %v318_v32  ;;  %v315_v43 = vsel %vm283_vm0, %v266_v37, 0  ;;  %v261_v14 = vld [vmem:[%s1826_s8 + $0x18] sm:$0xff] }
  0x1c   : > { %279 = vrot.lane.b32.xlu0 %v1819_v2, %s1727_s27  ;;  %506 = vmatpush.xpose.msra.mxu2 %v1848_v16  ;;  %v397_v21 = vand.u32 4294901760, %v1848_v16  ;;  %v403_v22 = vand.u32 4294901760, %v1852_v17  ;;  %v409_v27 = vand.u32 4294901760, %v1855_v18  ;;  %v1888_v36 = vsub.f32 %v324_v19, %v1862_v23 }
  0x1d   : > { %v415_v35 = vand.u32 4294901760, %v1875_v28  ;;  %v1901_v42 = vsub.f32 %v321_v24, %v1879_v31  ;;  %v1908_v45 = vsub.f32 %v318_v32, %v1893_v38  ;;  %v1914_v48 = vand.u32 4294901760, %v315_v43 }
  0x1e   : > { %341 = vmatpush.xpose.msra.mxu0 %v1839_v12  ;;  %v398_v25 = vsub.f32 %v1848_v16, %v397_v21  ;;  %571 = vmatpush.xpose.msra.mxu3 %v1839_v12  ;;  %v404_v26 = vsub.f32 %v1852_v17, %v403_v22  ;;  %v410_v34 = vsub.f32 %v1855_v18, %v409_v27  ;;  %v421_v41 = vand.u32 4294901760, %v1888_v36 }
  0x1f   : > { %v416_v40 = vsub.f32 %v1875_v28, %v415_v35  ;;  %v2597_v49 = vand.u32 4294901760, %v1901_v42  ;;  %v312_v50 = vsel %vm283_vm0, %v265_v44, 0  ;;  %v2593_v52 = vand.u32 4294901760, %v1908_v45  ;;  %v259_v44 = vld [vmem:[%s1826_s8 + $0x8] sm:$0xff] }
  0x20   : > { %v399_v30 = vand.u32 4294901760, %v398_v25  ;;  %509 = vmatpush.xpose.msra.mxu2 %v1852_v17  ;;  %v405_v33 = vand.u32 4294901760, %v404_v26  ;;  %v411_v39 = vand.u32 4294901760, %v410_v34  ;;  %v422_v47 = vsub.f32 %v1888_v36, %v421_v41  ;;  %v249_v17 = vld [vmem:[%s1980_s11 + $0x38] sm:$0xff] }
  0x21   : > { %v417_v46 = vand.u32 4294901760, %v416_v40  ;;  %v428_v54 = vsub.f32 %v1901_v42, %v2597_v49  ;;  %v1926_v55 = vand.u32 4294901760, %v312_v50  ;;  %v1929_v56 = vsub.f32 %v315_v43, %v1914_v48  ;;  %v257_v40 = vld [vmem:[%s1980_s11 + $0x78] sm:$0xff] }
  0x22   : > { %343 = vmatpush.xpose.msra.mxu0 %v1841_v13  ;;  %400 = vmatpush.xpose.msra.mxu1 %v399_v30  ;;  %v423_v53 = vand.u32 4294901760, %v422_v47  ;;  %v309_v58 = vsel %vm283_vm0, %v264_v51, 0  ;;  %v434_v59 = vsub.f32 %v1908_v45, %v2593_v52  ;;  %v306_v60 = vsel %vm283_vm0, %v263_v57, 0  ;;  %v260_v30 = vld [vmem:[%s1826_s8 + $0x10] sm:$0xff]  ;;  %v251_v52 = vld [vmem:[%s1980_s11 + $0x48] sm:$0xff] }
  0x23   : > { %573 = vmatpush.xpose.msra.mxu3 %v1841_v13  ;;  %v429_v61 = vand.u32 4294901760, %v428_v54  ;;  %v1940_v62 = vand.u32 4294901760, %v309_v58  ;;  %v2592_v63 = vand.u32 4294901760, %v1929_v56  ;;  %v1944_v3 = vsub.f32 %v312_v50, %v1926_v55  ;;  %v256_v57 = vld [vmem:[%s1980_s11 + $0x70] sm:$0xff] }
  0x24   : > { %512 = vmatpush.xpose.msra.mxu2 %v1855_v18  ;;  %v435_v5 = vand.u32 4294901760, %v434_v59  ;;  %v1949_v6 = vand.u32 4294901760, %v306_v60  ;;  %v303_v10 = vsel %vm283_vm0, %v262_v4, 0  ;;  %v300_v29 = vsel %vm283_vm0, %v261_v14, 0  ;;  %v258_v59 = vld [vmem:[%s1826_s8] sm:$0xff]  ;;  %v248_v18 = vld [vmem:[%s1980_s11 + $0x30] sm:$0xff] }
  0x25   : > { %v440_v7 = vsub.f32 %v1929_v56, %v2592_v63  ;;  %v2590_v8 = vand.u32 4294901760, %v1944_v3  ;;  %v1957_v9 = vsub.f32 %v309_v58, %v1940_v62  ;;  %v1963_v19 = vand.u32 4294901760, %v303_v10  ;;  %s202_s8 = sand.u32 1, %s1717_s13  }
  0x26   : > { %345 = vmatpush.xpose.msra.mxu0 %v1844_v15  ;;  %406 = vmatpush.xpose.msra.mxu1 %v405_v33  ;;  %v1971_v26 = vsub.f32 %v306_v60, %v1949_v6  ;;  %v1991_v37 = vand.u32 4294901760, %v300_v29  ;;  %v297_v43 = vsel %vm283_vm0, %v260_v30, 0  ;;  %v793_v47 = vsel %vm283_vm0, %v257_v40, 0  ;;  %v254_v40 = vld [vmem:[%s1980_s11 + $0x60] sm:$0xff]  ;;  %s203_s17 = scalar_lea.vmem [#allocation2], %s202_s8  ;;  %s1514_s24 = scalar_lea.sflag [#allocation3], %s202_s8 }
  0x27   : > { %575 = vmatpush.xpose.msra.mxu3 %v1844_v15  ;;  %v441_v20 = vand.u32 4294901760, %v440_v7  ;;  %v446_v24 = vsub.f32 %v1944_v3, %v2590_v8  ;;  %v2588_v25 = vand.u32 4294901760, %v1957_v9  ;;  %v1985_v32 = vsub.f32 %v303_v10, %v1963_v19  ;;  %s1524_s19 = sshll.u32 %s203_s17, 4  ;;  %s1525_s19 = int_to_ptr.vmem [resolvable:$true] %s1524_s19 }
  0x28   : > { %515 = vmatpush.xpose.msra.mxu2 %v1875_v28  ;;  %v2008_v54 = vsub.f32 %v300_v29, %v1991_v37  ;;  %v294_v58 = vsel %vm283_vm0, %v259_v44, 0  ;;  %v2015_v60 = vand.u32 4294901760, %v793_v47  ;;  %v790_v4 = vsel %vm283_vm0, %v256_v57, 0 }
  0x29   : > { %v447_v33 = vand.u32 4294901760, %v446_v24  ;;  %v452_v34 = vsub.f32 %v1957_v9, %v2588_v25  ;;  %v2023_v10 = vand.u32 4294901760, %v294_v58  ;;  %v291_v24 = vsel %vm283_vm0, %v258_v59, 0  ;;  %v252_v25 = vld [vmem:[%s1980_s11 + $0x50] sm:$0xff] }
  0x2a   : > { %347 = vmatpush.xpose.msra.mxu0 %v1862_v23  ;;  %412 = vmatpush.xpose.msra.mxu1 %v411_v39  ;;  %v2587_v39 = vand.u32 4294901760, %v1971_v26  ;;  %v2584_v14 = vand.u32 4294901760, %v2008_v54  ;;  %v2033_v29 = vsub.f32 %v793_v47, %v2015_v60  ;;  %v2035_v30 = vand.u32 4294901760, %v790_v4 }
  0x2b   : > { %577 = vmatpush.xpose.msra.mxu3 %v1862_v23  ;;  %v453_v50 = vand.u32 4294901760, %v452_v34  ;;  %v2043_v44 = vand.u32 4294901760, %v291_v24  ;;  %v2047_v47 = vsub.f32 %v294_v58, %v2023_v10  ;;  %v775_v16 = vsel %vm283_vm0, %v251_v52, 0 }
  0x2c   : > { %518 = vmatpush.xpose.msra.mxu2 %v1888_v36  ;;  %v458_v51 = vsub.f32 %v1971_v26, %v2587_v39  ;;  %v2589_v57 = vand.u32 4294901760, %v2033_v29  ;;  %v2055_v59 = vsub.f32 %v790_v4, %v2035_v30  ;;  %v2127_v49 = vand.u32 4294901760, %v775_v16 }
  0x2d   : > { %v766_v28 = vsel %vm283_vm0, %v248_v18, 0 }
  0x2e   : > { %349 = vmatpush.xpose.msra.mxu0 %v1879_v31  ;;  %418 = vmatpush.xpose.msra.mxu1 %v417_v46  ;;  %v2585_v46 = vand.u32 4294901760, %v1985_v32  ;;  %v459_v7 = vand.u32 4294901760, %v458_v51 }
  0x2f   : > { %579 = vmatpush.xpose.msra.mxu3 %v1879_v31 }
  0x30   : > { %521 = vmatpush.xpose.msra.mxu2 %v1901_v42 }
  0x32   : > { %351 = vmatpush.xpose.msra.mxu0 %v1893_v38  ;;  %424 = vmatpush.xpose.msra.mxu1 %v423_v53  ;;  %v2005_v53 = vand.u32 4294901760, %v297_v43 }
  0x33   : > { %581 = vmatpush.xpose.msra.mxu3 %v1893_v38 }
  0x34   : > { %524 = vmatpush.xpose.msra.mxu2 %v1908_v45 }
  0x36   : > { %353 = vmatpush.xpose.msra.mxu0 %v1914_v48  ;;  %430 = vmatpush.xpose.msra.mxu1 %v429_v61  ;;  %v464_v61 = vsub.f32 %v1985_v32, %v2585_v46  ;;  %v253_v46 = vld [vmem:[%s1980_s11 + $0x58] sm:$0xff] }
  0x37   : > { %583 = vmatpush.xpose.msra.mxu3 %v1914_v48 }
  0x38   : > { %527 = vmatpush.xpose.msra.mxu2 %v1929_v56  ;;  %v465_v34 = vand.u32 4294901760, %v464_v61  ;;  %v784_v61 = vsel %vm283_vm0, %v254_v40, 0 }
  0x39   : > { %v2071_v40 = vand.u32 4294901760, %v784_v61 }
  0x3a   : > { %355 = vmatpush.xpose.msra.mxu0 %v1926_v55  ;;  %436 = vmatpush.xpose.msra.mxu1 %v435_v5  ;;  %v255_v5 = vld [vmem:[%s1980_s11 + $0x68] sm:$0xff] }
  0x3b   : > { %585 = vmatpush.xpose.msra.mxu3 %v1926_v55  ;;  %v2088_v8 = vsub.f32 %v784_v61, %v2071_v40 }
  0x3c   : > { %530 = vmatpush.xpose.msra.mxu2 %v1944_v3 }
  0x3e   : > { %357 = vmatpush.xpose.msra.mxu0 %v1940_v62  ;;  %442 = vmatpush.xpose.msra.mxu1 %v441_v20  ;;  %v2027_v20 = vsub.f32 %v297_v43, %v2005_v53  ;;  %v470_v43 = vsub.f32 %v2008_v54, %v2584_v14  ;;  %v2064_v14 = vsub.f32 %v291_v24, %v2043_v44 }
  0x3f   : > { %587 = vmatpush.xpose.msra.mxu3 %v1940_v62 }
  0x40   : > { %533 = vmatpush.xpose.msra.mxu2 %v1957_v9  ;;  %v2595_v39 = vand.u32 4294901760, %v2064_v14 }
  0x42   : > { %359 = vmatpush.xpose.msra.mxu0 %v1949_v6  ;;  %448 = vmatpush.xpose.msra.mxu1 %v447_v33  ;;  %v787_v33 = vsel %vm283_vm0, %v255_v5, 0  ;;  %v471_v5 = vand.u32 4294901760, %v470_v43  ;;  %v2594_v43 = vand.u32 4294901760, %v2055_v59  ;;  %v488_v61 = vsub.f32 %v2064_v14, %v2595_v39 }
  0x43   : > { %589 = vmatpush.xpose.msra.mxu3 %v1949_v6  ;;  %v2050_v51 = vand.u32 4294901760, %v787_v33 }
  0x44   : > { %536 = vmatpush.xpose.msra.mxu2 %v1971_v26  ;;  %v489_v39 = vand.u32 4294901760, %v488_v61 }
  0x45   : > { %v2069_v4 = vsub.f32 %v787_v33, %v2050_v51 }
  0x46   : > { %361 = vmatpush.xpose.msra.mxu0 %v1963_v19  ;;  %454 = vmatpush.xpose.msra.mxu1 %v453_v50  ;;  %v2586_v50 = vand.u32 4294901760, %v2027_v20 }
  0x47   : > { %591 = vmatpush.xpose.msra.mxu3 %v1963_v19 }
  0x48   : > { %539 = vmatpush.xpose.msra.mxu2 %v1985_v32  ;;  %v476_v58 = vsub.f32 %v2027_v20, %v2586_v50  ;;  %v781_v50 = vsel %vm283_vm0, %v253_v46, 0 }
  0x4a   : > { %363 = vmatpush.xpose.msra.mxu0 %v1991_v37  ;;  %460 = vmatpush.xpose.msra.mxu1 %v459_v7  ;;  %v2591_v7 = vand.u32 4294901760, %v2047_v47  ;;  %v477_v24 = vand.u32 4294901760, %v476_v58  ;;  %v2094_v58 = vand.u32 4294901760, %v781_v50 }
  0x4b   : > { %593 = vmatpush.xpose.msra.mxu3 %v1991_v37 }
  0x4c   : > { %542 = vmatpush.xpose.msra.mxu2 %v2008_v54  ;;  %v482_v33 = vsub.f32 %v2047_v47, %v2591_v7  ;;  %v778_v7 = vsel %vm283_vm0, %v252_v25, 0  ;;  %v872_v25 = vand.u32 4294901760, %v2088_v8 }
  0x4e   : > { %365 = vmatpush.xpose.msra.mxu0 %v2005_v53  ;;  %466 = vmatpush.xpose.msra.mxu1 %v465_v34  ;;  %v855_v34 = vsub.f32 %v2033_v29, %v2589_v57  ;;  %v2596_v57 = vand.u32 4294901760, %v2069_v4  ;;  %v483_v63 = vand.u32 4294901760, %v482_v33  ;;  %v2111_v33 = vsub.f32 %v781_v50, %v2094_v58 }
  0x4f   : > { %595 = vmatpush.xpose.msra.mxu3 %v2005_v53 }
  0x50   : > { %545 = vmatpush.xpose.msra.mxu2 %v2027_v20  ;;  %v856_v46 = vand.u32 4294901760, %v855_v34  ;;  %v867_v34 = vsub.f32 %v2069_v4, %v2596_v57  ;;  %v878_v50 = vand.u32 4294901760, %v2111_v33 }
  0x52   : > { %367 = vmatpush.xpose.msra.mxu0 %v2023_v10  ;;  %472 = vmatpush.xpose.msra.mxu1 %v471_v5  ;;  %v861_v5 = vsub.f32 %v2055_v59, %v2594_v43  ;;  %v2113_v43 = vand.u32 4294901760, %v778_v7  ;;  %v868_v57 = vand.u32 4294901760, %v867_v34  ;;  %v2142_v34 = vsub.f32 %v775_v16, %v2127_v49 }
  0x53   : > { %597 = vmatpush.xpose.msra.mxu3 %v2023_v10 }
  0x54   : > { %548 = vmatpush.xpose.msra.mxu2 %v2047_v47  ;;  %v890_v16 = vand.u32 4294901760, %v2142_v34 }
  0x56   : > { %369 = vmatpush.xpose.msra.mxu0 %v2043_v44  ;;  %478 = vmatpush.xpose.msra.mxu1 %v477_v24  ;;  %v862_v24 = vand.u32 4294901760, %v861_v5  ;;  %v2125_v5 = vsub.f32 %v778_v7, %v2113_v43  ;;  %v879_v7 = vsub.f32 %v2111_v33, %v878_v50 }
  0x57   : > { %599 = vmatpush.xpose.msra.mxu3 %v2043_v44 }
  0x58   : > { %551 = vmatpush.xpose.msra.mxu2 %v2064_v14  ;;  %v884_v61 = vand.u32 4294901760, %v2125_v5 }
  0x5a   : > { %622 = vmatpush.xpose.msrb.mxu0 %v397_v21  ;;  %v250_v21 = vld [vmem:[%s1980_s11 + $0x40] sm:$0xff]  ;;  %484 = vmatpush.xpose.msra.mxu1 %v483_v63 }
  0x5b   : > { %857 = vmatpush.xpose.msrb.mxu3 %v856_v46  ;;  %v873_v46 = vsub.f32 %v2088_v8, %v872_v25  ;;  %v772_v52 = vsel %vm283_vm0, %v250_v21, 0 }
  0x5c   : > { %796 = vmatpush.xpose.msrb.mxu2 %v2015_v60  ;;  %v2135_v63 = vand.u32 4294901760, %v772_v52 }
  0x5e   : > { %626 = vmatpush.xpose.msrb.mxu0 %v403_v22  ;;  %490 = vmatpush.xpose.msra.mxu1 %v489_v39  ;;  %v874_v22 = vand.u32 4294901760, %v873_v46  ;;  %v769_v39 = vsel %vm283_vm0, %v249_v17, 0  ;;  %v2172_v17 = vand.u32 4294901760, %v766_v28 }
  0x5f   : > { %863 = vmatpush.xpose.msrb.mxu3 %v862_v24  ;;  %v885_v24 = vsub.f32 %v2125_v5, %v884_v61 }
  0x60   : > { %798 = vmatpush.xpose.msrb.mxu2 %v2035_v30  ;;  %v2185_v18 = vsub.f32 %v766_v28, %v2172_v17 }
  0x61   : > { %v886_v46 = vand.u32 4294901760, %v885_v24  ;;  %v245_v24 = vld [vmem:[%s1980_s11 + $0x18] sm:$0xff] }
  0x62   : > { %630 = vmatpush.xpose.msrb.mxu0 %v409_v27  ;;  %697 = vmatpush.xpose.msrb.mxu1 %v1837_v11  ;;  %v2151_v11 = vsub.f32 %v772_v52, %v2135_v63  ;;  %v2153_v27 = vand.u32 4294901760, %v769_v39  ;;  %v891_v52 = vsub.f32 %v2142_v34, %v890_v16  ;;  %v2598_v28 = vand.u32 4294901760, %v2185_v18 }
  0x63   : > { %869 = vmatpush.xpose.msrb.mxu3 %v868_v57  ;;  %v880_v57 = vand.u32 4294901760, %v879_v7 }
  0x64   : > { %800 = vmatpush.xpose.msrb.mxu2 %v2050_v51  ;;  %v2167_v21 = vsub.f32 %v769_v39, %v2153_v27  ;;  %v892_v39 = vand.u32 4294901760, %v891_v52 }
  0x66   : > { %634 = vmatpush.xpose.msrb.mxu0 %v415_v35  ;;  %699 = vmatpush.xpose.msrb.mxu1 %v1839_v12  ;;  %v247_v35 = vld [vmem:[%s1980_s11 + $0x28] sm:$0xff]  ;;  %v896_v12 = vand.u32 4294901760, %v2151_v11  ;;  %v2599_v7 = vand.u32 4294901760, %v2167_v21 }
  0x67   : > { %875 = vmatpush.xpose.msrb.mxu3 %v874_v22  ;;  %v763_v36 = vsel %vm283_vm0, %v247_v35, 0 }
  0x68   : > { %802 = vmatpush.xpose.msrb.mxu2 %v2071_v40  ;;  %v897_v22 = vsub.f32 %v2151_v11, %v896_v12 }
  0x6a   : > { %638 = vmatpush.xpose.msrb.mxu0 %v421_v41  ;;  %701 = vmatpush.xpose.msrb.mxu1 %v1841_v13  ;;  %v246_v41 = vld [vmem:[%s1980_s11 + $0x20] sm:$0xff]  ;;  %v2607_v13 = vand.u32 4294901760, %v1901_v42  ;;  %v898_v35 = vand.u32 4294901760, %v897_v22 }
  0x6b   : > { %881 = vmatpush.xpose.msrb.mxu3 %v880_v57  ;;  %v2187_v57 = vand.u32 4294901760, %v763_v36  ;;  %v760_v42 = vsel %vm283_vm0, %v246_v41, 0  ;;  %v757_v41 = vsel %vm283_vm0, %v245_v24, 0 }
  0x6c   : > { %804 = vmatpush.xpose.msrb.mxu2 %v2094_v58  ;;  %v2210_v22 = vand.u32 4294901760, %v757_v41 }
  0x6d   : > { %v2200_v52 = vsub.f32 %v763_v36, %v2187_v57  ;;  %v909_v36 = vsub.f32 %v2185_v18, %v2598_v28 }
  0x6e   : > { %642 = vmatpush.xpose.msrb.mxu0 %v2607_v13  ;;  %703 = vmatpush.xpose.msrb.mxu1 %v1844_v15  ;;  %v2608_v15 = vand.u32 4294901760, %v1908_v45  ;;  %v2202_v13 = vand.u32 4294901760, %v760_v42  ;;  %v244_v45 = vld [vmem:[%s1980_s11 + $0x10] sm:$0xff] }
  0x6f   : > { %887 = vmatpush.xpose.msrb.mxu3 %v886_v46  ;;  %v903_v46 = vsub.f32 %v2167_v21, %v2599_v7 }
  0x70   : > { %806 = vmatpush.xpose.msrb.mxu2 %v2113_v43  ;;  %v2217_v24 = vsub.f32 %v760_v42, %v2202_v13 }
  0x72   : > { %646 = vmatpush.xpose.msrb.mxu0 %v2608_v15  ;;  %705 = vmatpush.xpose.msrb.mxu1 %v1862_v23  ;;  %v2609_v23 = vand.u32 4294901760, %v1929_v56  ;;  %v2600_v15 = vand.u32 4294901760, %v2200_v52  ;;  %v754_v56 = vsel %vm283_vm0, %v244_v45, 0  ;;  %v2602_v28 = vand.u32 4294901760, %v2217_v24  ;;  %v242_v45 = vld [vmem:[%s1980_s11] sm:$0xff] }
  0x73   : > { %893 = vmatpush.xpose.msrb.mxu3 %v892_v39  ;;  %v904_v39 = vand.u32 4294901760, %v903_v46  ;;  %v910_v46 = vand.u32 4294901760, %v909_v36  ;;  %v2232_v7 = vand.u32 4294901760, %v754_v56 }
  0x74   : > { %808 = vmatpush.xpose.msrb.mxu2 %v2127_v49  ;;  %v915_v42 = vsub.f32 %v2200_v52, %v2600_v15  ;;  %v921_v36 = vsub.f32 %v2217_v24, %v2602_v28 }
  0x76   : > { %650 = vmatpush.xpose.msrb.mxu0 %v2609_v23  ;;  %707 = vmatpush.xpose.msrb.mxu1 %v1879_v31  ;;  %v243_v23 = vld [vmem:[%s1980_s11 + $0x8] sm:$0xff]  ;;  %v2610_v31 = vand.u32 4294901760, %v1944_v3  ;;  %s1522_s11 = scalar_lea.hbm %s2583_s3, %s1773_s16 }
  0x77   : > { %899 = vmatpush.xpose.msrb.mxu3 %v898_v35  ;;  %v2226_v35 = vsub.f32 %v757_v41, %v2210_v22  ;;  %v751_v3 = vsel %vm283_vm0, %v243_v23, 0  ;;  %v2612_v23 = vand.u32 4294901760, %v1971_v26  ;;  %s1526_s20 = sshll.u32 %s1522_s11, 4  ;;  %s1527_s20 = int_to_ptr.hbm [resolvable:$true] %s1526_s20 }
  0x78   : > { %810 = vmatpush.xpose.msrb.mxu2 %v2135_v63  ;;  %v2247_v15 = vand.u32 4294901760, %v751_v3  ;;  %s1677_s25 = sshra.s32 %s1527_s20, 4  ;;  %s1678_s25 = int_to_ptr.hbm [resolvable:$true] %s1677_s25 }
  0x79   : > { %v2601_v41 = vand.u32 4294901760, %v2226_v35  ;;  %s1679_s26 = scalar_lea.hbm %s1678_s25, 1  ;;  %p1684_p0 = scmp.lt.s32.totalorder %s1678_s25, %s2583_s3 }
  0x7a   : > { %654 = vmatpush.xpose.msrb.mxu0 %v2610_v31  ;;  %709 = vmatpush.xpose.msrb.mxu1 %v1893_v38  ;;  %v2611_v38 = vand.u32 4294901760, %v1957_v9  ;;  %v2245_v31 = vsub.f32 %v754_v56, %v2232_v7  ;;  %v748_v9 = vsel %vm283_vm0, %v242_v45, 0  ;;  %p1680_p11 = scmp.ne.s32.totalorder %s1678_s25, %s1679_s26  ;;  %p1685_p1 = scmp.lt.s32.totalorder %s1683_s28, %s1679_s26 }
  0x7b   : > { %905 = vmatpush.xpose.msrb.mxu3 %v904_v39  ;;  %v916_v39 = vand.u32 4294901760, %v915_v42  ;;  %v2259_v42 = vsub.f32 %v751_v3, %v2247_v15 }
  0x7c   : > { %812 = vmatpush.xpose.msrb.mxu2 %v2153_v27  ;;  %v2604_v56 = vand.u32 4294901760, %v2245_v31  ;;  %p1681_p12 = pnand %p1680_p11, %p1790_p5  ;;  %p1686_p2 = por %p1685_p1, %p1684_p0 }
  0x7e   : > { %658 = vmatpush.xpose.msrb.mxu0 %v2611_v38  ;;  %711 = vmatpush.xpose.msrb.mxu1 %v1914_v48  ;;  %v927_v48 = vsub.f32 %v2226_v35, %v2601_v41  ;;  %v2261_v38 = vand.u32 4294901760, %v748_v9  ;;  %v933_v3 = vsub.f32 %v2245_v31, %v2604_v56  ;;  %v2603_v41 = vand.u32 4294901760, %v2259_v42  ;;  %p1682_p13 = pneg %p1681_p12 }
  0x7f   : > { %911 = vmatpush.xpose.msrb.mxu3 %v910_v46  ;;  %v922_v46 = vand.u32 4294901760, %v921_v36 }
  0x80   : > { %814 = vmatpush.xpose.msrb.mxu2 %v2172_v17  ;;  %v2275_v28 = vsub.f32 %v748_v9, %v2261_v38  ;;  %v939_v9 = vsub.f32 %v2259_v42, %v2603_v41  ;;  %p1687_p3 = pnand %p1686_p2, %p1682_p13 }
  0x82   : > { %662 = vmatpush.xpose.msrb.mxu0 %v2612_v23  ;;  %713 = vmatpush.xpose.msrb.mxu1 %v1926_v55  ;;  %v2613_v55 = vand.u32 4294901760, %v1985_v32  ;;  %v928_v23 = vand.u32 4294901760, %v927_v48  ;;  %v940_v56 = vand.u32 4294901760, %v939_v9 }
  0x83   : > { %917 = vmatpush.xpose.msrb.mxu3 %v916_v39 }
  0x84   : > { %816 = vmatpush.xpose.msrb.mxu2 %v2187_v57 }
  0x86   : > { %v278_v45 = vpop.permute.xlu0 %277  ;;  %666 = vmatpush.xpose.msrb.mxu0 %v2613_v55  ;;  %715 = vmatpush.xpose.msrb.mxu1 %v1940_v62  ;;  %v282_v36 = vpop.permute.xlu1 %281  ;;  %v2614_v62 = vand.u32 4294901760, %v2008_v54  ;;  %v944_v55 = vand.u32 4294901760, %v2275_v28  ;;  %v741_v54 = vsel %vm283_vm0, %v1803_v0, 0 }
  0x87   : > { %v284_v26 = vsel %vm283_vm0, %v278_v45, 0  ;;  %923 = vmatpush.xpose.msrb.mxu3 %v922_v46  ;;  %v288_v48 = vsel %vm283_vm0, %v282_v36, 0  ;;  %v934_v45 = vand.u32 4294901760, %v933_v3  ;;  %v2615_v3 = vand.u32 4294901760, %v2027_v20 }
  0x88   : > { %v2268_v39 = vand.u32 4294901760, %v284_v26  ;;  %818 = vmatpush.xpose.msrb.mxu2 %v2202_v13  ;;  %v945_v0 = vsub.f32 %v2275_v28, %v944_v55  ;;  %v2616_v20 = vand.u32 4294901760, %v2047_v47  ;;  %v2617_v47 = vand.u32 4294901760, %v2064_v14 }
  0x8a   : > { %v371_v32 = vsub.f32 %v284_v26, %v2268_v39  ;;  %492 = vmatmul.f32.vlgmr.msra.gmra.mxu1 %v2268_v39  ;;  %670 = vmatpush.xpose.msrb.mxu0 %v2614_v62  ;;  %v946_v9 = vand.u32 4294901760, %v945_v0 }
  0x8b   : > { %717 = vmatpush.xpose.msrb.mxu1 %v1949_v6  ;;  %929 = vmatpush.xpose.msrb.mxu3 %v928_v23  ;;  %v2291_v6 = vand.u32 4294901760, %v288_v48 }
  0x8c   : > { %554 = vmatmul.f32.vlgmr.msra.gmra.mxu2 %v371_v32  ;;  %v372_v46 = vand.u32 4294901760, %v371_v32 }
  0x8d   : > { %820 = vmatpush.xpose.msrb.mxu2 %v2210_v22 }
  0x8e   : > { %v280_v26 = vpop.permute.xlu0 %279  ;;  %v373_v62 = vsub.f32 %v371_v32, %v372_v46  ;;  %603 = vmatmul.f32.vlgmr.msra.gmra.mxu3 %v372_v46  ;;  %674 = vmatpush.xpose.msrb.mxu0 %v2615_v3  ;;  %v2302_v32 = vand.u32 4294901760, %v741_v54  ;;  %v745_v3 = vsel %vm283_vm0, %v1810_v1, 0  ;;  %v2620_v1 = vand.u32 4294901760, %v2069_v4 }
  0x8f   : > { %v286_v23 = vsel %vm283_vm0, %v280_v26, 0  ;;  %719 = vmatpush.xpose.msrb.mxu1 %v1963_v19  ;;  %935 = vmatpush.xpose.msrb.mxu3 %v934_v45  ;;  %v387_v19 = vsub.f32 %v288_v48, %v2291_v6 }
  0x90   : > { %v2297_v36 = vand.u32 4294901760, %v286_v23  ;;  %v374_v41 = vand.u32 4294901760, %v373_v62  ;;  %v2312_v26 = vsub.f32 %v741_v54, %v2302_v32 }
  0x91   : > { %822 = vmatpush.xpose.msrb.mxu2 %v2232_v7  ;;  %v388_v48 = vand.u32 4294901760, %v387_v19 }
  0x92   : > { %v379_v46 = vsub.f32 %v286_v23, %v2297_v36  ;;  %375 = vmatmul.f32.vlgmr.msra.gmra.mxu0 %v374_v41  ;;  %496 = vmatmul.f32.gmra.mxu1 %v2297_v36  ;;  %v743_v41 = vsel %vm283_vm0, %v1819_v2, 0  ;;  %v829_v2 = vand.u32 4294901760, %v2312_v26 }
  0x93   : > { %678 = vmatpush.xpose.msrb.mxu0 %v2616_v20  ;;  %721 = vmatpush.xpose.msrb.mxu1 %v1991_v37  ;;  %v389_v54 = vsub.f32 %v387_v19, %v388_v48 }
  0x94   : > { %559 = vmatmul.f32.gmra.mxu2 %v379_v46  ;;  %941 = vmatpush.xpose.msrb.mxu3 %v940_v56  ;;  %v380_v45 = vand.u32 4294901760, %v379_v46  ;;  %v2321_v56 = vand.u32 4294901760, %v743_v41  ;;  %v830_v23 = vsub.f32 %v2312_v26, %v829_v2 }
  0x95   : > { %824 = vmatpush.xpose.msrb.mxu2 %v2247_v15  ;;  %v390_v0 = vand.u32 4294901760, %v389_v54 }
  0x96   : > { %v381_v62 = vsub.f32 %v379_v46, %v380_v45  ;;  %609 = vmatmul.f32.gmra.mxu3 %v380_v45  ;;  %v2332_v14 = vsub.f32 %v743_v41, %v2321_v56  ;;  %v831_v46 = vand.u32 4294901760, %v830_v23 }
  0x97   : > { %682 = vmatpush.xpose.msrb.mxu0 %v2617_v47  ;;  %723 = vmatpush.xpose.msrb.mxu1 %v2005_v53  ;;  %v2618_v53 = vand.u32 4294901760, %v2033_v29 }
  0x98   : > { %v382_v37 = vand.u32 4294901760, %v381_v62  ;;  %947 = vmatpush.xpose.msrb.mxu3 %v946_v9 }
  0x99   : > { %826 = vmatpush.xpose.msrb.mxu2 %v2261_v38 }
  0x9a   : > { %383 = vmatmul.f32.gmra.mxu0 %v382_v37  ;;  %500 = vmatmul.f32.gmra.mxu1 %v2291_v6 }
  0x9b   : > { %963 = vmatpush.xpose.msra.mxu0 %v2033_v29  ;;  %725 = vmatpush.xpose.msrb.mxu1 %v2023_v10  ;;  %v2619_v10 = vand.u32 4294901760, %v2055_v59  ;;  %v2345_v29 = vand.u32 4294901760, %v745_v3 }
  0x9c   : > { %1154 = vmatpush.xpose.msra.mxu3 %v2015_v60  ;;  %564 = vmatmul.f32.gmra.mxu2 %v387_v19  ;;  %v837_v19 = vand.u32 4294901760, %v2332_v14 }
  0x9d   : > { %1079 = vmatpush.xpose.msra.mxu2 %v2618_v53 }
  0x9e   : > { %615 = vmatmul.f32.gmra.mxu3 %v388_v48 }
  0x9f   : > { %966 = vmatpush.xpose.msra.mxu0 %v2055_v59  ;;  %727 = vmatpush.xpose.msrb.mxu1 %v2043_v44  ;;  %v2355_v44 = vsub.f32 %v745_v3, %v2345_v29 }
  0xa0   : > { %1156 = vmatpush.xpose.msra.mxu3 %v2035_v30 }
  0xa1   : > { %1083 = vmatpush.xpose.msra.mxu2 %v2619_v10  ;;  %v845_v59 = vand.u32 4294901760, %v2355_v44 }
  0xa2   : > { %391 = vmatmul.f32.gmra.mxu0 %v390_v0  ;;  %729 = vmatmul.f32.vlgmr.msrb.gmra.mxu1 %v2268_v39 }
  0xa3   : > { %969 = vmatpush.xpose.msra.mxu0 %v2069_v4  ;;  %1026 = vmatpush.xpose.msra.mxu1 %v2015_v60  ;;  %v838_v60 = vsub.f32 %v2332_v14, %v837_v19  ;;  %v2621_v4 = vand.u32 4294901760, %v2167_v21 }
  0xa4   : > { %1158 = vmatpush.xpose.msra.mxu3 %v2050_v51  ;;  %832 = vmatmul.f32.vlgmr.msrb.gmra.mxu2 %v831_v46 }
  0xa5   : > { %1087 = vmatpush.xpose.msra.mxu2 %v2620_v1 }
  0xa6   : > { %949 = vmatmul.f32.vlgmr.msrb.gmra.mxu3 %v2302_v32 }
  0xa7   : > { %972 = vmatpush.xpose.msra.mxu0 %v2088_v8  ;;  %1028 = vmatpush.xpose.msra.mxu1 %v2035_v30  ;;  %v839_v30 = vand.u32 4294901760, %v838_v60  ;;  %v846_v8 = vsub.f32 %v2355_v44, %v845_v59 }
  0xa8   : > { %1160 = vmatpush.xpose.msra.mxu3 %v2071_v40 }
  0xa9   : > { %1091 = vmatpush.xpose.msra.mxu2 %v872_v25  ;;  %v2626_v25 = vand.u32 4294901760, %v2245_v31 }
  0xaa   : > { %684 = vmatmul.f32.vlgmr.msrb.gmra.mxu0 %v2268_v39  ;;  %733 = vmatmul.f32.gmra.mxu1 %v2297_v36 }
  0xab   : > { %975 = vmatpush.xpose.msra.mxu0 %v2111_v33  ;;  %1030 = vmatpush.xpose.msra.mxu1 %v2050_v51  ;;  %v847_v51 = vand.u32 4294901760, %v846_v8  ;;  %v2428_v33 = vld [vmem:[%s2582_s2 + $0x28] sm:$0xff] }
  0xac   : > { %1162 = vmatpush.xpose.msra.mxu3 %v2094_v58  ;;  %840 = vmatmul.f32.gmra.mxu2 %v839_v30 }
  0xad   : > { %1095 = vmatpush.xpose.msra.mxu2 %v878_v50  ;;  %v2435_v50 = vld [vmem:[%s2582_s2 + $0x40] sm:$0xf] }
  0xae   : > { %953 = vmatmul.f32.gmra.mxu3 %v2321_v56 }
  0xaf   : > { %978 = vmatpush.xpose.msra.mxu0 %v2125_v5  ;;  %1032 = vmatpush.xpose.msra.mxu1 %v2071_v40  ;;  %v2622_v40 = vand.u32 4294901760, %v2185_v18  ;;  %v1728_v5 = vmov 0  }
  0xb0   : > { %1164 = vmatpush.xpose.msra.mxu3 %v2113_v43  ;;  %1654 = vset.pattern.permute.xlu2 %v1728_v5 }
  0xb1   : > { %1099 = vmatpush.xpose.msra.mxu2 %v884_v61  ;;  %1653 = vset.pattern.permute.xlu1 %v1728_v5  ;;  %v2463_v61 = vld [vmem:[%s2582_s2 + $0x10] sm:$0xff] }
  0xb2   : > { %688 = vmatmul.f32.gmra.mxu0 %v2297_v36  ;;  %737 = vmatmul.f32.gmra.mxu1 %v2291_v6 }
  0xb3   : > { %981 = vmatpush.xpose.msra.mxu0 %v2142_v34  ;;  %1034 = vmatpush.xpose.msra.mxu1 %v2094_v58  ;;  %v2625_v58 = vand.u32 4294901760, %v2226_v35 }
  0xb4   : > { %1166 = vmatpush.xpose.msra.mxu3 %v2127_v49  ;;  %848 = vmatmul.f32.gmra.mxu2 %v847_v51 }
  0xb5   : > { %1103 = vmatpush.xpose.msra.mxu2 %v890_v16  ;;  %1205 = vperm.xlu2 %1654, %v2428_v33  }
  0xb6   : > { %957 = vmatmul.f32.gmra.mxu3 %v2345_v29  ;;  %1210 = vperm.xlu1 %1653, %v2435_v50  }
  0xb7   : > { %984 = vmatpush.xpose.msra.mxu0 %v2151_v11  ;;  %1036 = vmatpush.xpose.msra.mxu1 %v2113_v43  ;;  %v2624_v43 = vand.u32 4294901760, %v2217_v24 }
  0xb8   : > { %1168 = vmatpush.xpose.msra.mxu3 %v2135_v63 }
  0xb9   : > { %1107 = vmatpush.xpose.msra.mxu2 %v896_v12 }
  0xba   : > { %692 = vmatmul.f32.gmra.mxu0 %v2291_v6 }
  0xbb   : > { %987 = vmatpush.xpose.msra.mxu0 %v2167_v21  ;;  %1038 = vmatpush.xpose.msra.mxu1 %v2127_v49  ;;  %v2623_v49 = vand.u32 4294901760, %v2200_v52 }
  0xbc   : > { %1170 = vmatpush.xpose.msra.mxu3 %v2153_v27 }
  0xbd   : > { %1111 = vmatpush.xpose.msra.mxu2 %v2621_v4  ;;  %1200 = vperm.xlu2 %1654, %v2463_v61  }
  0xbf   : > { %990 = vmatpush.xpose.msra.mxu0 %v2185_v18  ;;  %1040 = vmatpush.xpose.msra.mxu1 %v2135_v63  ;;  %v2627_v63 = vand.u32 4294901760, %v2259_v42 }
  0xc0   : > { %1172 = vmatpush.xpose.msra.mxu3 %v2172_v17 }
  0xc1   : > { %1115 = vmatpush.xpose.msra.mxu2 %v2622_v40 }
  0xc3   : > { %993 = vmatpush.xpose.msra.mxu0 %v2200_v52  ;;  %1042 = vmatpush.xpose.msra.mxu1 %v2153_v27 }
  0xc4   : > { %1174 = vmatpush.xpose.msra.mxu3 %v2187_v57 }
  0xc5   : > { %1119 = vmatpush.xpose.msra.mxu2 %v2623_v49 }
  0xc7   : > { %996 = vmatpush.xpose.msra.mxu0 %v2217_v24  ;;  %1044 = vmatpush.xpose.msra.mxu1 %v2172_v17 }
  0xc8   : > { %1176 = vmatpush.xpose.msra.mxu3 %v2202_v13 }
  0xc9   : > { %1123 = vmatpush.xpose.msra.mxu2 %v2624_v43 }
  0xcb   : > { %999 = vmatpush.xpose.msra.mxu0 %v2226_v35  ;;  %1046 = vmatpush.xpose.msra.mxu1 %v2187_v57 }
  0xcc   : > { %1178 = vmatpush.xpose.msra.mxu3 %v2210_v22 }
  0xcd   : > { %1127 = vmatpush.xpose.msra.mxu2 %v2625_v58 }
  0xcf   : > { %1002 = vmatpush.xpose.msra.mxu0 %v2245_v31  ;;  %1048 = vmatpush.xpose.msra.mxu1 %v2202_v13 }
  0xd0   : > { %1180 = vmatpush.xpose.msra.mxu3 %v2232_v7 }
  0xd1   : > { %1131 = vmatpush.xpose.msra.mxu2 %v2626_v25  ;;  %v236_v25 = vld [vmem:[%s2582_s2 + $0x20] sm:$0xff] }
  0xd3   : > { %1005 = vmatpush.xpose.msra.mxu0 %v2259_v42  ;;  %1050 = vmatpush.xpose.msra.mxu1 %v2210_v22 }
  0xd4   : > { %1182 = vmatpush.xpose.msra.mxu3 %v2247_v15 }
  0xd5   : > { %1135 = vmatpush.xpose.msra.mxu2 %v2627_v63 }
  0xd7   : > { %1008 = vmatpush.xpose.msra.mxu0 %v2275_v28  ;;  %1052 = vmatpush.xpose.msra.mxu1 %v2232_v7 }
  0xd8   : > { %1184 = vmatpush.xpose.msra.mxu3 %v2261_v38 }
  0xd9   : > { %1139 = vmatpush.xpose.msra.mxu2 %v944_v55 }
  0xda   : > { %1011 = vmatmul.f32.vlgmr.msra.gmra.mxu0 %v2312_v26 }
  0xdb   : > { %1054 = vmatpush.xpose.msra.mxu1 %v2247_v15  ;;  %1186 = vmatmul.f32.vlgmr.msra.gmra.mxu3 %v2302_v32 }
  0xdc   : > { %1141 = vmatmul.f32.vlgmr.msra.gmra.mxu2 %v2302_v32 }
  0xdf   : > { %1056 = vmatpush.xpose.msra.mxu1 %v2261_v38 }
  0xe2   : > { %1016 = vmatmul.f32.gmra.mxu0 %v2332_v14  ;;  %1060 = vmatmul.f32.vlgmr.msra.gmra.mxu1 %v829_v2 }
  0xe3   : > { %1190 = vmatmul.f32.gmra.mxu3 %v2321_v56 }
  0xe4   : > { %1145 = vmatmul.f32.gmra.mxu2 %v2321_v56 }
  0xea   : > { %1021 = vmatmul.f32.gmra.mxu0 %v2355_v44  ;;  %1066 = vmatmul.f32.gmra.mxu1 %v837_v19 }
  0xeb   : > { %1194 = vmatmul.f32.gmra.mxu3 %v2345_v29 }
  0xec   : > { %1149 = vmatmul.f32.gmra.mxu2 %v2345_v29 }
  0xf2   : > { %1072 = vmatmul.f32.gmra.mxu1 %v845_v59 }
 0x107   : > { %v493_v16 = vpop.f32.mrf.mxu1 }
 0x10f   : > { %v376_v34 = vpop.f32.mrf.mxu0  ;;  %v555_v27 = vpop.f32.mrf.mxu2 }
 0x110   : > { %v497_v7 = vpop.f32.mrf.mxu1  ;;  %v494_v31 = vadd.f32 %v493_v16, %v376_v34  ;;  %v1206_v44 = vpop.permute.xlu2 %1205 }
 0x111   : > { %v604_v11 = vpop.f32.mrf.mxu3 }
 0x112   : > { %v556_v39 = vadd.f32 %v555_v27, %v494_v31 }
 0x114   : > { %v605_v20 = vadd.f32 %v604_v11, %v556_v39  ;;  %v1236_v11 = vsel %vm1231_vm1, %v236_v25, 0 }
 0x117   : > { %v384_v12 = vpop.f32.mrf.mxu0  ;;  %v560_v17 = vpop.f32.mrf.mxu2 }
 0x118   : > { %v501_v52 = vpop.f32.mrf.mxu1  ;;  %v498_v42 = vadd.f32 %v497_v7, %v384_v12  ;;  %v1201_v16 = vpop.permute.xlu2 %1200 }
 0x119   : > { %v610_v21 = vpop.f32.mrf.mxu3 }
 0x11a   : > { %v561_v32 = vadd.f32 %v560_v17, %v498_v42 }
 0x11c   : > { %v611_v9 = vadd.f32 %v610_v21, %v561_v32  ;;  %v235_v21 = vld [vmem:[%s2582_s2 + $0x8] sm:$0xff] }
 0x11f   : > { %v392_v18 = vpop.f32.mrf.mxu0  ;;  %v565_v28 = vpop.f32.mrf.mxu2 }
 0x120   : > { %v730_v24 = vpop.f32.mrf.mxu1  ;;  %v502_v26 = vadd.f32 %v501_v52, %v392_v18  ;;  %v2477_v18 = vand.u32 4294901760, %v1236_v11 }
 0x121   : > { %v616_v57 = vpop.f32.mrf.mxu3 }
 0x122   : > { %v566_v37 = vadd.f32 %v565_v28, %v502_v26 }
 0x124   : > { %v617_v53 = vadd.f32 %v616_v57, %v566_v37  ;;  %v1233_v57 = vsel %vm1231_vm1, %v235_v21, 0  ;;  %v1729_v37 = vmov 1  }
 0x125   : > { %v2483_v31 = vand.u32 4294901760, %v1233_v57  ;;  %1656 = vset.pattern.permute.xlu1 %v1729_v37  ;;  %1655 = vset.pattern.permute.xlu0 %v1729_v37 }
 0x126   : > { %1224 = vperm.xlu1 %1656, %v2428_v33   ;;  %1220 = vperm.xlu0 %1655, %v2463_v61  }
 0x127   : > { %v685_v13 = vpop.f32.mrf.mxu0  ;;  %v833_v15 = vpop.f32.mrf.mxu2  ;;  %1657 = vset.pattern.permute.xlu2 %v1729_v37 }
 0x128   : > { %v734_v55 = vpop.f32.mrf.mxu1  ;;  %v686_v45 = vadd.f32 %v685_v13, %v605_v20  ;;  %v2492_v20 = vsub.f32 %v1233_v57, %v2483_v31  ;;  %1228 = vperm.xlu2 %1657, %v2435_v50  }
 0x129   : > { %v950_v22 = vpop.f32.mrf.mxu3 }
 0x12a   : > { %v731_v62 = vadd.f32 %v730_v24, %v686_v45 }
 0x12c   : > { %v834_v54 = vadd.f32 %v833_v15, %v731_v62  ;;  %v1266_v62 = vand.u32 4294901760, %v2492_v20 }
 0x12e   : > { %v951_v3 = vadd.f32 %v950_v22, %v834_v54 }
 0x12f   : > { %v689_v35 = vpop.f32.mrf.mxu0  ;;  %v841_v6 = vpop.f32.mrf.mxu2 }
 0x130   : > { %v738_v48 = vpop.f32.mrf.mxu1  ;;  %v690_v56 = vadd.f32 %v689_v35, %v611_v9  ;;  %v237_v35 = vld [vmem:[%s2582_s2 + $0x38] sm:$0xf] }
 0x131   : > { %v954_v38 = vpop.f32.mrf.mxu3 }
 0x132   : > { %v735_v14 = vadd.f32 %v734_v55, %v690_v56  ;;  %v1211_v55 = vpop.permute.xlu1 %1210 }
 0x134   : > { %v842_v10 = vadd.f32 %v841_v6, %v735_v14 }
 0x136   : > { %v955_v30 = vadd.f32 %v954_v38, %v842_v10  ;;  %v2486_v38 = vsub.f32 %v1236_v11, %v2477_v18 }
 0x137   : > { %v693_v36 = vpop.f32.mrf.mxu0  ;;  %v849_v2 = vpop.f32.mrf.mxu2 }
 0x138   : > { %v694_v29 = vadd.f32 %v693_v36, %v617_v53  ;;  %v1239_v36 = vsel %vm1231_vm1, %v237_v35, 0  ;;  %v1274_v9 = vand.u32 4294901760, %v2486_v38 }
 0x139   : > { %v958_v41 = vpop.f32.mrf.mxu3 }
 0x13a   : > { %v739_v59 = vadd.f32 %v738_v48, %v694_v29 }
 0x13c   : > { %v850_v49 = vadd.f32 %v849_v2, %v739_v59  ;;  %v1275_v2 = vsub.f32 %v2486_v38, %v1274_v9 }
 0x13e   : > { %v959_v27 = vadd.f32 %v958_v41, %v850_v49  ;;  %v2497_v41 = vand.u32 4294901760, %v1239_v36  ;;  %v1276_v10 = vand.u32 4294901760, %v1275_v2  ;;  %v1730_v49 = vmov 2  }
 0x13f   : > { %1658 = vset.pattern.permute.xlu1 %v1730_v49  ;;  %1660 = vset.pattern.permute.xlu0 %v1730_v49 }
 0x140   : > { %v2509_v14 = vsub.f32 %v1239_v36, %v2497_v41  ;;  %1483 = vperm.xlu1 %1658, %v2463_v61   ;;  %1659 = vset.pattern.permute.xlu2 %v1730_v49 }
 0x141   : > { %1491 = vperm.xlu0 %1660, %v2435_v50   ;;  %1487 = vperm.xlu2 %1659, %v2428_v33  }
 0x157   : > { %v1012_v47 = vpop.f32.mrf.mxu0 }
 0x158   : > { %v1013_v19 = vadd.f32 %v1012_v47, %v951_v3 }
 0x15e   : > { %v1187_v23 = vpop.f32.mrf.mxu3 }
 0x15f   : > { %v1061_v0 = vpop.f32.mrf.mxu1  ;;  %v1142_v46 = vpop.f32.mrf.mxu2 }
 0x160   : > { %v1017_v1 = vpop.f32.mrf.mxu0  ;;  %v1062_v60 = vadd.f32 %v1061_v0, %v1013_v19  ;;  %v1282_v19 = vand.u32 4294901760, %v2509_v14 }
 0x161   : > { %v1018_v8 = vadd.f32 %v1017_v1, %v955_v30 }
 0x162   : > { %v1143_v51 = vadd.f32 %v1142_v46, %v1062_v60 }
 0x164   : > { %v1188_v63 = vadd.f32 %v1187_v23, %v1143_v51  ;;  %v1267_v23 = vsub.f32 %v2492_v20, %v1266_v62 }
 0x166   : > { %v1191_v40 = vpop.f32.mrf.mxu3  ;;  %v1213_v28 = vadd.f32 %v1201_v16, %v1188_v63  ;;  %v1268_v1 = vand.u32 4294901760, %v1267_v23 }
 0x167   : > { %v1067_v4 = vpop.f32.mrf.mxu1  ;;  %v1146_v58 = vpop.f32.mrf.mxu2 }
 0x168   : > { %v1068_v43 = vadd.f32 %v1067_v4, %v1018_v8  ;;  %v1022_v34 = vpop.f32.mrf.mxu0  ;;  %v1216_v39 = vmax.f32 %v1213_v28, 0.0  ;;  %v1283_v8 = vsub.f32 %v2509_v14, %v1282_v19 }
 0x169   : > { %v1023_v17 = vadd.f32 %v1022_v34, %v959_v27 }
 0x16a   : > { %v1147_v5 = vadd.f32 %v1146_v58, %v1068_v43  ;;  %v2495_v26 = vand.u32 4294901760, %v1216_v39  ;;  %v241_v43 = vld [vmem:[%s2582_s2 + $0x10] ss:$0 sm:$0xff]  ;;  %v1731_v58 = vmov 3  }
 0x16b   : > { %1661 = vset.pattern.permute.xlu1 %v1731_v58  ;;  %1662 = vset.pattern.permute.xlu0 %v1731_v58 }
 0x16c   : > { %v1192_v12 = vadd.f32 %v1191_v40, %v1147_v5  ;;  %v1315_v54 = vsub.f32 %v1216_v39, %v2495_v26  ;;  %v1284_v40 = vand.u32 4294901760, %v1283_v8  ;;  %1508 = vperm.xlu1 %1661, %v241_v43  }
 0x16e   : > { %v1214_v7 = vadd.f32 %v1206_v44, %v1192_v12  ;;  %v1195_v24 = vpop.f32.mrf.mxu3  ;;  %v1316_v46 = vand.u32 4294901760, %v1315_v54 }
 0x16f   : > { %v1073_v52 = vpop.f32.mrf.mxu1  ;;  %v1150_v22 = vpop.f32.mrf.mxu2 }
 0x170   : > { %v1074_v13 = vadd.f32 %v1073_v52, %v1023_v17  ;;  %v1217_v15 = vmax.f32 %v1214_v7, 0.0  ;;  %v1317_v59 = vsub.f32 %v1315_v54, %v1316_v46 }
 0x172   : > { %v1151_v42 = vadd.f32 %v1150_v22, %v1074_v13  ;;  %v2489_v32 = vand.u32 4294901760, %v1217_v15  ;;  %v1318_v4 = vand.u32 4294901760, %v1317_v59 }
 0x174   : > { %v1196_v6 = vadd.f32 %v1195_v24, %v1151_v42  ;;  %v1309_v47 = vsub.f32 %v1217_v15, %v2489_v32 }
 0x176   : > { %v1215_v45 = vadd.f32 %v1211_v55, %v1196_v6  ;;  %v1310_v0 = vand.u32 4294901760, %v1309_v47 }
 0x178   : > { %v1218_v48 = vmax.f32 %v1215_v45, 0.0  ;;  %v1311_v60 = vsub.f32 %v1309_v47, %v1310_v0 }
 0x17a   : > { %v1243_v56 = vsel %vm1241_vm2, %v1218_v48, 0  ;;  %v1312_v51 = vand.u32 4294901760, %v1311_v60 }
 0x17b   : > { %v1258_v53 = vand.u32 4294901760, %v1243_v56 }
 0x17d   : > { %v1303_v3 = vsub.f32 %v1243_v56, %v1258_v53  ;;  %1259 = vmatpush.msrb.mxu0 %v1258_v53  ;;  %1603 = vmatpush.msrb.mxu2 %v1258_v53 }
 0x17f   : > { %1261 = vmatpush.msrb.mxu0 %v2489_v32  ;;  %1604 = vmatpush.msrb.mxu2 %v2489_v32  ;;  %v1304_v29 = vand.u32 4294901760, %v1303_v3 }
 0x181   : > { %1263 = vmatpush.msrb.mxu0 %v2495_v26  ;;  %1605 = vmatpush.msrb.mxu2 %v2495_v26  ;;  %v1305_v44 = vsub.f32 %v1303_v3, %v1304_v29 }
 0x182   : > { %1277 = vmatmul.f32.vlgmr.msrb.gmra.mxu2 %v1276_v10  ;;  %1269 = vmatmul.f32.vlgmr.msrb.gmra.mxu0 %v1268_v1  ;;  %v1229_v13 = vpop.permute.xlu2 %1228 }
 0x183   : > { %1348 = vmatpush.msra.mxu2 %v1303_v3  ;;  %1425 = vmatpush.msra.mxu0 %v1304_v29  ;;  %v1306_v30 = vand.u32 4294901760, %v1305_v44 }
 0x185   : > { %1351 = vmatpush.msra.mxu2 %v1309_v47  ;;  %1429 = vmatpush.msra.mxu0 %v1310_v0 }
 0x186   : > { %1307 = vmatpush.msrb.mxu1 %v1306_v30  ;;  %1606 = vmatpush.msrb.mxu3 %v1306_v30 }
 0x187   : > { %1354 = vmatpush.msra.mxu2 %v1315_v54  ;;  %1433 = vmatpush.msra.mxu0 %v1316_v46 }
 0x188   : > { %1313 = vmatpush.msrb.mxu1 %v1312_v51  ;;  %1607 = vmatpush.msrb.mxu3 %v1312_v51 }
 0x18a   : > { %1319 = vmatpush.msrb.mxu1 %v1318_v4  ;;  %1608 = vmatpush.msrb.mxu3 %v1318_v4 }
 0x18b   : > { %1325 = vmatmul.f32.vlgmr.msrb.gmra.mxu3 %v2477_v18  ;;  %1285 = vmatmul.f32.gmra.mxu2 %v1284_v40 }
 0x18c   : > { %1461 = vmatpush.msra.mxu1 %v1258_v53  ;;  %1385 = vmatpush.msra.mxu3 %v1258_v53 }
 0x18d   : > { %1435 = vmatmul.f32.vlgmr.msra.gmra.mxu0 %v2483_v31  ;;  %1321 = vmatmul.f32.vlgmr.msrb.gmra.mxu1 %v2483_v31 }
 0x18e   : > { %1463 = vmatpush.msra.mxu1 %v2489_v32  ;;  %1387 = vmatpush.msra.mxu3 %v2489_v32 }
 0x190   : > { %1465 = vmatpush.msra.mxu1 %v2495_v26  ;;  %1389 = vmatpush.msra.mxu3 %v2495_v26 }
 0x193   : > { %1329 = vmatmul.f32.gmra.mxu3 %v2497_v41  ;;  %1357 = vmatmul.f32.vlgmr.msra.gmra.mxu2 %v2492_v20 }
 0x195   : > { %1439 = vmatmul.f32.gmra.mxu0 %v2477_v18  ;;  %1467 = vmatmul.f32.vlgmr.msra.gmra.mxu1 %v2483_v31 }
 0x198   : > { %v1221_v11 = vpop.permute.xlu0 %1220  ;;  %v1225_v12 = vpop.permute.xlu1 %1224 }
 0x19b   : > { %1393 = vmatmul.f32.vlgmr.msra.gmra.mxu3 %v1266_v62  ;;  %1362 = vmatmul.f32.gmra.mxu2 %v2486_v38  ;;  %v1488_v47 = vpop.permute.xlu2 %1487 }
 0x19d   : > { %1443 = vmatmul.f32.gmra.mxu0 %v2497_v41  ;;  %1471 = vmatmul.f32.gmra.mxu1 %v2477_v18 }
 0x1a3   : > { %1399 = vmatmul.f32.gmra.mxu3 %v1274_v9  ;;  %1367 = vmatmul.f32.gmra.mxu2 %v2509_v14 }
 0x1a5   : > { %1475 = vmatmul.f32.gmra.mxu1 %v2497_v41 }
 0x1ab   : > { %1405 = vmatmul.f32.gmra.mxu3 %v1282_v19 }
 0x1b2   : > { %v1484_v2 = vpop.permute.xlu1 %1483 }
 0x1b3   : > { %v1492_v14 = vpop.permute.xlu0 %1491 }
 0x1de   : > { %v1509_v59 = vpop.permute.xlu1 %1508 }
 0x1ff   : > { %v1270_v25 = vpop.f32.mrf.mxu0 }
 0x200   : > { %v1271_v27 = vadd.f32 %v1270_v25, %v1221_v11 }
 0x205   : > { %v1278_v33 = vpop.f32.mrf.mxu2 }
 0x206   : > { %v1279_v18 = vadd.f32 %v1278_v33, %v1225_v12 }
 0x20a   : > { %v1322_v5 = vpop.f32.mrf.mxu1  ;;  %v1436_v16 = vpop.f32.mrf.mxu0 }
 0x20b   : > { %v1323_v7 = vadd.f32 %v1322_v5, %v1271_v27 }
 0x20e   : > { %v1326_v50 = vpop.f32.mrf.mxu3  ;;  %v1286_v61 = vpop.f32.mrf.mxu2 }
 0x20f   : > { %v1327_v52 = vadd.f32 %v1326_v50, %v1279_v18  ;;  %v1287_v42 = vadd.f32 %v1286_v61, %v1229_v13 }
 0x212   : > { %v1468_v21 = vpop.f32.mrf.mxu1  ;;  %v1440_v22 = vpop.f32.mrf.mxu0 }
 0x216   : > { %v1330_v63 = vpop.f32.mrf.mxu3  ;;  %v1358_v34 = vpop.f32.mrf.mxu2 }
 0x217   : > { %v1359_v28 = vadd.f32 %v1358_v34, %v1323_v7  ;;  %v1331_v36 = vadd.f32 %v1330_v63, %v1287_v42 }
 0x21a   : > { %v1472_v31 = vpop.f32.mrf.mxu1  ;;  %v1444_v26 = vpop.f32.mrf.mxu0 }
 0x21e   : > { %v1394_v17 = vpop.f32.mrf.mxu3  ;;  %v1363_v57 = vpop.f32.mrf.mxu2 }
 0x21f   : > { %v1364_v15 = vadd.f32 %v1363_v57, %v1327_v52  ;;  %v1395_v24 = vadd.f32 %v1394_v17, %v1359_v28 }
 0x221   : > { %v1437_v55 = vadd.f32 %v1436_v16, %v1395_v24 }
 0x222   : > { %v1476_v48 = vpop.f32.mrf.mxu1 }
 0x223   : > { %v1469_v45 = vadd.f32 %v1468_v21, %v1437_v55 }
 0x225   : > { %v1479_v56 = vmax.f32 %v1469_v45, 0.0 }
 0x226   : > { %v1400_v35 = vpop.f32.mrf.mxu3  ;;  %v1368_v6 = vpop.f32.mrf.mxu2 }
 0x227   : > { %v1401_v38 = vadd.f32 %v1400_v35, %v1364_v15  ;;  %v1369_v20 = vadd.f32 %v1368_v6, %v1331_v36  ;;  %v1494_v3 = vmul.f32 %v1484_v2, %v1479_v56 }
 0x229   : > { %v1441_v39 = vadd.f32 %v1440_v22, %v1401_v38 }
 0x22b   : > { %v1473_v32 = vadd.f32 %v1472_v31, %v1441_v39 }
 0x22d   : > { %v1480_v62 = vmax.f32 %v1473_v32, 0.0 }
 0x22e   : > { %v1406_v9 = vpop.f32.mrf.mxu3 }
 0x22f   : > { %v1407_v41 = vadd.f32 %v1406_v9, %v1369_v20  ;;  %v1495_v53 = vmul.f32 %v1488_v47, %v1480_v62 }
 0x231   : > { %v1445_v37 = vadd.f32 %v1444_v26, %v1407_v41  ;;  %v1497_v10 = vadd.f32 %v1495_v53, %v1494_v3 }
 0x233   : > { %v1477_v54 = vadd.f32 %v1476_v48, %v1445_v37 }
 0x235   : > { %v1481_v23 = vmax.f32 %v1477_v54, 0.0 }
 0x237   : > { %v1496_v0 = vmul.f32 %v1492_v14, %v1481_v23 }
 0x239   : > { %v1498_v29 = vsel %vm1241_vm2, %v1496_v0, 0.0 }
 0x23a   : > { %v1499_v46 = vadd.f32 %v1498_v29, %v1497_v10 }
 0x23c   : > { %v1500_v19 = vrot.slane %v1499_v46, 4 }
 0x23e   : > { %v1501_v1 = vadd.f32 %v1500_v19, %v1499_v46 }
 0x240   : > { %v1502_v44 = vrot.slane %v1501_v1, 2 }
 0x242   : > { %v1503_v60 = vadd.f32 %v1502_v44, %v1501_v1 }
 0x244   : > { %v1504_v30 = vrot.slane %v1503_v60, 1 }
 0x246   : > { %v1505_v8 = vadd.f32 %v1504_v30, %v1503_v60 }
 0x248   : > { %v1511_v51 = vadd.f32 %v1509_v59, %v1505_v8 }
 0x24a   : > { %1512 = vst [vmem:[%s203_s17] sm:$0x1] %v1511_v51 }
 0x24b   : > { %1690 = shalt.err (!%p1687_p3)
}
 0x24c   : > { %1609 = dma.vmem_to_hbm [thread:$0]  (%p1790_p5), %s1525_s19, 16, %s1527_s20, %s1514_s24  }
 0x24d PF: > { %p1615_p4 = scmp.ge.s32.totalorder %s1725_s15, 2  ;;  %s1538_s4 = sand.u32 1, %s1713_s12  }
 0x24e   : > { %s1539_s5 = scalar_lea.sflag [#allocation3], %s1538_s4 }
 0x24f   : > { %p1612_p7 = pnand %p1615_p4, %p1794_p6 }
 0x251   : > { %p1613_p8 = pneg %p1612_p7 }
 0x253   : > { %1708 = dma.done.wait (%p1613_p8), %s1539_s5, 16  }
 0x254   : > { %1710 = vsyncadd (%p1613_p8), %s1539_s5, 4294967280  ;;  %p13_p9 = scmp.ge.s32.totalorder %s1777_s18, 4   ;;  %s2628_s12 = smov %s1717_s13 }
 0x255   : > { %s2629_s13 = smov %s1721_s14  ;;  %s2630_s14 = smov %s1788_s21 }
 0x256   : > { %s2631_s15 = smov %s1777_s18  ;;  %15 = sbr.rel (!%p13_p9) target bundleno = 3 (0x3), region = 70 }
 0x25b   :  { %1544 = vsyncpa [#allocation3], 1 }
 0x25c   :  { %1546 = vsyncpa [#allocation3 + $0x1], 1 }

</bundles_post_ra>
